<compile_context>
chip_gen: v7x
topology: tpu7x:2x2x1
jax: 0.10.0
libtpu: 0.0.40
codegen_flags: <defaults>
</compile_context>

<pallas_src>
import functools

import jax
import jax.numpy as jnp
from jax import lax
from jax.experimental import pallas as pl
from jax.experimental.pallas import tpu as pltpu

COLS_CANDIDATES = (512, 256, 128)   # lane-dense last dims (multiples of 128), widest first
MAX_ROW_BLK = 1024                  # 1024 x 512 f32 = 2 MiB per input block (safe on v5e/v6e/v7x)
N_SPLIT = 2                         # leading 'parallel' axis for megacore; ~free on 1-TC chips
VMEM_LIMIT = 32 * 1024 * 1024       # headroom over v5e's 16 MiB default scope, <= all physical


# --------------------------------------------------------------------------- kernels

def _mse_partial_kernel(gt_ref, out_ref, acc_ref, *, rows, row_blk, chunks,
                        acc_rows, need_mask):
    """Fold (gt-out)^2 of one (row_blk, cols) tile into a tiny resident (acc_rows, cols) slab."""
    c = pl.program_id(0)   # split (megacore 'parallel' axis)
    i = pl.program_id(1)   # chunk within split ('arbitrary' reduction axis)

    @pl.when(i == 0)
    def _():
        acc_ref[...] = jnp.zeros_like(acc_ref)

    d = gt_ref[...].astype(jnp.float32) - out_ref[...].astype(jnp.float32)
    sq = d * d
    if need_mask:
        # Zero rows beyond the valid extent (ragged last block / clamped overhang blocks).
        row_start = (c * chunks + i) * row_blk
        rid = row_start + lax.broadcasted_iota(jnp.int32, (row_blk, 1), 0)
        sq = jnp.where(rid < rows, sq, 0.0)
    if acc_rows == row_blk:
        acc_ref[...] += sq
    else:
        # (row_blk, cols) -> (row_blk//acc_rows, acc_rows, cols): layout-preserving split of the
        # sublane dim; the axis-0 sum is pure cross-vreg VPU adds (no XLU), hidden under DMA.
        acc_ref[...] += jnp.sum(
            sq.reshape(row_blk // acc_rows, acc_rows, sq.shape[-1]), axis=0)


def _sq_err_kernel(gt_ref, out_ref, sq_ref):
    """Elementwise squared error (testing / reduction='none')."""
    d = gt_ref[...].astype(jnp.float32) - out_ref[...].astype(jnp.float32)
    sq_ref[...] = (d * d).astype(sq_ref.dtype)


def _entropy_kernel(att_ref, ent_ref, *, rows, row_blk, need_mask):
    """Accumulate sum(softmax(att,1) * log_softmax(att,1)) into a resident SMEM scalar."""
    i = pl.program_id(0)

    @pl.when(i == 0)
    def _():
        ent_ref[0] = 0.0

    a = att_ref[...].astype(jnp.float32)
    m = jnp.max(a, axis=1, keepdims=True)
    z = a - m
    e = jnp.exp(z)
    s = jnp.sum(e, axis=1, keepdims=True)
    # per-row  sum_j p_j * log p_j = (1/s) * sum_j e_j * (z_j - log s)   (exact divide)
    row = jnp.sum(e * (z - jnp.log(s)), axis=1, keepdims=True) / s
    if need_mask:
        rid = i * row_blk + lax.broadcasted_iota(jnp.int32, row.shape, 0)
        row = jnp.where(rid < rows, row, 0.0)
    ent_ref[0] += jnp.sum(row)


# --------------------------------------------------------------------------- layout helpers

def _as_2d(x):
    """Flatten to a lane-dense (rows, cols) view.  Zero-copy whenever numel % 128 == 0."""
    flat = x.reshape(-1)
    n = flat.shape[0]
    for cols in COLS_CANDIDATES:
        if n % cols == 0:
            return flat.reshape(n // cols, cols), 0
    # Rare fallback (numel not a multiple of 128): minimal zero pad (zeros contribute 0 to MSE).
    cols = COLS_CANDIDATES[-1]
    pad = (-n) % cols
    flat = jnp.pad(flat, (0, pad))
    return flat.reshape((n + pad) // cols, cols), pad


def _row_layout(rows):
    row_blk = rows if rows <= MAX_ROW_BLK else MAX_ROW_BLK   # full-dim block or multiple of 8
    c_total = pl.cdiv(rows, row_blk)
    splits = min(N_SPLIT, c_total)
    chunks = pl.cdiv(c_total, splits)
    need_mask = (rows % row_blk != 0) or (splits * chunks != c_total)
    acc_rows = 8 if row_blk % 8 == 0 else row_blk            # tiny decoupled accumulator slab
    return row_blk, c_total, splits, chunks, acc_rows, need_mask


# --------------------------------------------------------------------------- wrappers

def _mse_sum(ground_truth, output):
    """sum((gt - out)^2): tiled, pipelined streaming reduction.

    No padding copies, no elementwise writeback, tiny per-split partial slabs.
    """
    gt2, _ = _as_2d(ground_truth)
    out2, _ = _as_2d(output)
    rows, cols = gt2.shape
    row_blk, c_total, splits, chunks, acc_rows, need_mask = _row_layout(rows)

    if splits * chunks == c_total:
        in_map = lambda c, i: (c * chunks + i, 0)
    else:
        # Clamp overhang blocks into range; their rows are zeroed by the in-kernel mask.
        in_map = lambda c, i: (jnp.minimum(c * chunks + i, c_total - 1), 0)

    kernel = functools.partial(
        _mse_partial_kernel, rows=rows, row_blk=row_blk, chunks=chunks,
        acc_rows=acc_rows, need_mask=need_mask)
    in_bytes = jnp.dtype(gt2.dtype).itemsize + jnp.dtype(out2.dtype).itemsize

    partials = pl.pallas_call(
        kernel,
        out_shape=jax.ShapeDtypeStruct((splits, acc_rows, cols), jnp.float32),
        grid_spec=pltpu.PrefetchScalarGridSpec(
            num_scalar_prefetch=0,
            grid=(splits, chunks),
            in_specs=[pl.BlockSpec((row_blk, cols), in_map),
                      pl.BlockSpec((row_blk, cols), in_map)],
            # Per-split resident accumulator slot (same block across the 'arbitrary' axis).
            out_specs=pl.BlockSpec((None, acc_rows, cols), lambda c, i: (c, 0, 0)),
        ),
        compiler_params=pltpu.CompilerParams(
            dimension_semantics=("parallel", "arbitrary"),
            vmem_limit_bytes=VMEM_LIMIT),
        cost_estimate=pl.CostEstimate(
            flops=4 * rows * cols, transcendentals=0,
            bytes_accessed=rows * cols * in_bytes + splits * acc_rows * cols * 4),
    )(gt2, out2)
    # Final reduction of a <=16 KB slab; negligible.
    return jnp.sum(partials, dtype=jnp.float32)


def _sq_err(ground_truth, output):
    """Elementwise (gt - out)^2 in the inputs' promoted dtype, at gt's shape."""
    numel = ground_truth.size
    orig_shape = ground_truth.shape
    out_dtype = jnp.promote_types(ground_truth.dtype, output.dtype)
    gt2, pad = _as_2d(ground_truth)
    out2, _ = _as_2d(output)
    rows, cols = gt2.shape
    row_blk = rows if rows <= MAX_ROW_BLK else MAX_ROW_BLK
    byts = (jnp.dtype(gt2.dtype).itemsize + jnp.dtype(out2.dtype).itemsize
            + jnp.dtype(out_dtype).itemsize)

    sq = pl.pallas_call(
        _sq_err_kernel,
        out_shape=jax.ShapeDtypeStruct((rows, cols), out_dtype),
        grid_spec=pltpu.PrefetchScalarGridSpec(
            num_scalar_prefetch=0,
            grid=(pl.cdiv(rows, row_blk),),
            in_specs=[pl.BlockSpec((row_blk, cols), lambda i: (i, 0)),
                      pl.BlockSpec((row_blk, cols), lambda i: (i, 0))],
            out_specs=pl.BlockSpec((row_blk, cols), lambda i: (i, 0)),
        ),
        compiler_params=pltpu.CompilerParams(
            dimension_semantics=("parallel",),
            vmem_limit_bytes=VMEM_LIMIT),
        cost_estimate=pl.CostEstimate(
            flops=2 * rows * cols, transcendentals=0,
            bytes_accessed=rows * cols * byts),
    )(gt2, out2)
    if pad:
        sq = sq.reshape(-1)[:numel]   # only on the rare minimal-pad fallback
    return sq.reshape(orig_shape)


def _entropy_sum(att):
    """sum(softmax(att, 1) * log_softmax(att, 1)), row-tiled, exact arithmetic."""
    if att.ndim != 2:
        att = jnp.moveaxis(att, 1, -1).reshape(-1, att.shape[1])
    rows, cols = att.shape
    row_blk = rows if rows <= 512 else 512
    c_total = pl.cdiv(rows, row_blk)
    need_mask = (rows % row_blk) != 0

    kernel = functools.partial(_entropy_kernel, rows=rows, row_blk=row_blk,
                               need_mask=need_mask)
    ent = pl.pallas_call(
        kernel,
        out_shape=jax.ShapeDtypeStruct((1,), jnp.float32),
        grid_spec=pltpu.PrefetchScalarGridSpec(
            num_scalar_prefetch=0,
            grid=(c_total,),
            in_specs=[pl.BlockSpec((row_blk, cols), lambda i: (i, 0))],
            out_specs=pl.BlockSpec(memory_space=pltpu.MemorySpace.SMEM),
        ),
        compiler_params=pltpu.CompilerParams(dimension_semantics=("arbitrary",)),
        cost_estimate=pl.CostEstimate(
            flops=6 * rows * cols, transcendentals=2 * rows * cols,
            bytes_accessed=rows * cols * jnp.dtype(att.dtype).itemsize + 4),
    )(att)
    return ent[0]


def memae_loss(prediction, ground_truth, training=False, testing=False,
               validating=False, reg_param=0.0002):
    output = prediction['output']
    loss = None
    if training:
        mse = _mse_sum(ground_truth, output) / ground_truth.size
        ent = _entropy_sum(prediction['att'])
        loss = mse + (-1.0) * reg_param * ent
    if validating:
        loss = _mse_sum(ground_truth, output) / ground_truth.size
    if testing:
        loss = _sq_err(ground_truth, output)
    return loss


# --------------------------------------------------------------------------- demo / checks

if __name__ == "__main__":
    key = jax.random.PRNGKey(0)
    k1, k2, k3, k4, k5 = jax.random.split(key, 5)

    # Small shapes consistent with the module: NCHW reconstruction + (B, mem_dim) attention.
    gt = jax.random.normal(k1, (2, 4, 16, 16), dtype=jnp.float32)
    out = jax.random.normal(k2, (2, 4, 16, 16), dtype=jnp.float32)
    att = jax.random.uniform(k3, (8, 128), dtype=jnp.float32)
    pred = {'output': out, 'att': att}

    loss_train = jax.block_until_ready(memae_loss(pred, gt, training=True))
    loss_val = jax.block_until_ready(memae_loss(pred, gt, validating=True))
    loss_test = jax.block_until_ready(memae_loss(pred, gt, testing=True))

    # Plain-JAX reference.
    ref_mse = jnp.mean((gt - out) ** 2)
    p = jax.nn.softmax(att, axis=1)
    lp = jax.nn.log_softmax(att, axis=1)
    ref_train = ref_mse + (-1.0) * 0.0002 * jnp.sum(p * lp)

    assert jnp.allclose(loss_val, ref_mse, rtol=1e-5, atol=1e-6), (loss_val, ref_mse)
    assert jnp.allclose(loss_train, ref_train, rtol=1e-5, atol=1e-5), (loss_train, ref_train)
    assert loss_test.shape == gt.shape and loss_test.dtype == gt.dtype
    assert jnp.allclose(loss_test, (gt - out) ** 2, rtol=1e-5, atol=1e-6)

    # Extra coverage: >1024-row stream with ragged tail + overhang blocks exercises the split,
    # index-map clamp and in-kernel row-mask path (no padding copies anywhere on this path).
    gt_b = jax.random.normal(k4, (2, 1500, 512), dtype=jnp.float32)   # 3000 rows of 512
    out_b = jax.random.normal(k5, (2, 1500, 512), dtype=jnp.float32)
    val_b = jax.block_until_ready(
        memae_loss({'output': out_b, 'att': att}, gt_b, validating=True))
    assert jnp.allclose(val_b, jnp.mean((gt_b - out_b) ** 2), rtol=1e-5, atol=1e-6)

    # Extra coverage: numel not a multiple of 128 exercises the minimal-pad fallback.
    gt_c = jax.random.normal(k4, (3, 5, 7, 11), dtype=jnp.float32)
    out_c = jax.random.normal(k5, (3, 5, 7, 11), dtype=jnp.float32)
    val_c = jax.block_until_ready(
        memae_loss({'output': out_c, 'att': att}, gt_c, validating=True))
    tst_c = jax.block_until_ready(
        memae_loss({'output': out_c, 'att': att}, gt_c, testing=True))
    assert jnp.allclose(val_c, jnp.mean((gt_c - out_c) ** 2), rtol=1e-5, atol=1e-6)
    assert jnp.allclose(tst_c, (gt_c - out_c) ** 2, rtol=1e-5, atol=1e-6)

    print("KERNEL_OK")
</pallas_src>

<mosaic_0001>
module attributes {stable_mosaic.version = 11 : i64} {
  func.func @_mse_partial_kernel(%arg0: i32, %arg1: i32, %arg2: memref<4x512xf32, #tpu.memory_space<vmem>>, %arg3: memref<4x512xf32, #tpu.memory_space<vmem>>, %arg4: memref<1x4x512xf32, #tpu.memory_space<vmem>>) attributes {dimension_semantics = [#tpu.dimension_semantics<parallel>, #tpu.dimension_semantics<arbitrary>], iteration_bounds = array<i64: 1, 1>, scalar_prefetch = 0 : i64, scratch_operands = 0 : i64, tpu.core_type = #tpu.core_type<tc>, window_params = [{transform_indices = @transform_0, window_bounds = array<i64: 4, 512>}, {transform_indices = @transform_1, window_bounds = array<i64: 4, 512>}, {transform_indices = @transform_2, window_bounds = array<i64: 1, 4, 512>}]} {
    %c0_i32 = arith.constant 0 : i32
    %0 = arith.cmpi eq, %arg1, %c0_i32 : i32
    %1 = arith.extui %0 : i1 to i32
    %c0_i32_0 = arith.constant 0 : i32
    %2 = arith.cmpi ne, %1, %c0_i32_0 : i32
    scf.if %2 {
      %cst = arith.constant 0.000000e+00 : f32
      %13 = vector.broadcast %cst : f32 to vector<4x512xf32>
      %c0_10 = arith.constant 0 : index
      %c0_11 = arith.constant 0 : index
      %c0_12 = arith.constant 0 : index
      %14 = vector.load %arg4[%c0_10, %c0_11, %c0_12] : memref<1x4x512xf32, #tpu.memory_space<vmem>>, vector<1x4x512xf32>
      %15 = vector.shape_cast %14 : vector<1x4x512xf32> to vector<4x512xf32>
      %16 = vector.shape_cast %13 : vector<4x512xf32> to vector<1x4x512xf32>
      tpu.vector_store %arg4[%c0_10, %c0_11, %c0_12], %16 {strides = array<i32>} : memref<1x4x512xf32, #tpu.memory_space<vmem>>, vector<1x4x512xf32>,
    } else {
    }
    %c0 = arith.constant 0 : index
    %c0_1 = arith.constant 0 : index
    %3 = vector.load %arg2[%c0, %c0_1] : memref<4x512xf32, #tpu.memory_space<vmem>>, vector<4x512xf32>
    %c0_2 = arith.constant 0 : index
    %c0_3 = arith.constant 0 : index
    %4 = vector.load %arg3[%c0_2, %c0_3] : memref<4x512xf32, #tpu.memory_space<vmem>>, vector<4x512xf32>
    %5 = arith.subf %3, %4 : vector<4x512xf32>
    %6 = arith.mulf %5, %5 : vector<4x512xf32>
    %c0_4 = arith.constant 0 : index
    %c0_5 = arith.constant 0 : index
    %c0_6 = arith.constant 0 : index
    %7 = vector.load %arg4[%c0_4, %c0_5, %c0_6] : memref<1x4x512xf32, #tpu.memory_space<vmem>>, vector<1x4x512xf32>
    %8 = vector.shape_cast %7 : vector<1x4x512xf32> to vector<4x512xf32>
    %9 = arith.addf %8, %6 : vector<4x512xf32>
    %c0_7 = arith.constant 0 : index
    %c0_8 = arith.constant 0 : index
    %c0_9 = arith.constant 0 : index
    %10 = vector.load %arg4[%c0_7, %c0_8, %c0_9] : memref<1x4x512xf32, #tpu.memory_space<vmem>>, vector<1x4x512xf32>
    %11 = vector.shape_cast %10 : vector<1x4x512xf32> to vector<4x512xf32>
    %12 = vector.shape_cast %9 : vector<4x512xf32> to vector<1x4x512xf32>
    tpu.vector_store %arg4[%c0_7, %c0_8, %c0_9], %12 {strides = array<i32>} : memref<1x4x512xf32, #tpu.memory_space<vmem>>, vector<1x4x512xf32>,
    return
  }
  func.func @transform_0(%arg0: i32, %arg1: i32) -> (i32, i32) {
    %c1_i32 = arith.constant 1 : i32
    %0 = arith.muli %arg0, %c1_i32 : i32
    %1 = arith.addi %0, %arg1 : i32
    %c0_i32 = arith.constant 0 : i32
    %c0_i32_0 = arith.constant 0 : i32
    return %1, %c0_i32 : i32, i32
  }
  func.func @transform_1(%arg0: i32, %arg1: i32) -> (i32, i32) {
    %c1_i32 = arith.constant 1 : i32
    %0 = arith.muli %arg0, %c1_i32 : i32
    %1 = arith.addi %0, %arg1 : i32
    %c0_i32 = arith.constant 0 : i32
    %c0_i32_0 = arith.constant 0 : i32
    return %1, %c0_i32 : i32, i32
  }
  func.func @transform_2(%arg0: i32, %arg1: i32) -> (i32, i32, i32) {
    %c0_i32 = arith.constant 0 : i32
    %c0_i32_0 = arith.constant 0 : i32
    %c0_i32_1 = arith.constant 0 : i32
    return %arg0, %c0_i32, %c0_i32_0 : i32, i32, i32
  }
}

</mosaic_0001>

<bundles_post_ra>
// kernel: tpu_custom_call.1
= control target key start
LH: loop header
LB: loop body
LE: loop exit
PB: predicated region body
PF: predicated region fallthrough
CT: control target
= control target key end

     0   :  { %7 = vsyncpa [#allocation3], 0  ;;  %s212_s0 = inlined_call_operand.hbm [shape: f32[4,512], index: 0, kind: input, shape index: {}]   ;;  %s213_s1 = inlined_call_operand.hbm [shape: f32[4,512], index: 1, kind: input, shape index: {}]   ;;  %s214_s2 = inlined_call_operand.hbm [shape: f32[1,4,512], index: 2, kind: output, shape index: {}]  }
   0x1   :  { %8 = vsyncpa [#allocation6], 0 }
   0x2   :  { %9 = vsyncpa [#allocation4], 0  ;;  %s158_s9 = smov [#allocation2]   ;;  %s159_s11 = smov [#allocation5]  }
   0x3   :  { %s20_s10 = sshll.u32 %s158_s9, 4  ;;  %s34_s12 = sshll.u32 %s159_s11, 4  ;;  %s21_s10 = int_to_ptr.vmem [resolvable:$true] %s20_s10  ;;  %s35_s12 = int_to_ptr.vmem [resolvable:$true] %s34_s12 }
   0x4   :  { %s86_s15 = scalar_lea.hbm %s212_s0, 256 }
   0x5   :  { %p87_p0 = scmp.ne.s32.totalorder %s212_s0, %s86_s15  ;;  %p90_p1 = scmp.lt.u32.totalorder %s86_s15, %s212_s0 }
   0x7   :  { %p92_p2 = pnand %p90_p1, %p87_p0 }
   0x9   :  { %95 = shalt.err (!%p92_p2)
}
   0xa   :  { %s96_s20 = scalar_lea.vmem %s21_s10, 256  ;;  %p101_p4 = scmp.lt.s32.totalorder %s21_s10, %s21_s10 }
   0xb   :  { %p97_p3 = scmp.ne.s32.totalorder %s21_s10, %s96_s20  ;;  %p102_p5 = scmp.lt.s32.totalorder %s96_s20, %s96_s20 }
   0xd   :  { %p103_p6 = por %p102_p5, %p101_p4 }
   0xf   :  { %p104_p7 = pnand %p103_p6, %p97_p3 }
  0x11   :  { %107 = shalt.err (!%p104_p7)
}
  0x12   :  { %23 = dma.hbm_to_vmem [thread:$0]  %s212_s0, 256, %s21_s10, [#allocation3]  }
  0x13   :  { %s108_s25 = scalar_lea.hbm %s213_s1, 256 }
  0x14   :  { %p109_p8 = scmp.ne.s32.totalorder %s213_s1, %s108_s25  ;;  %p112_p9 = scmp.lt.u32.totalorder %s108_s25, %s213_s1 }
  0x16   :  { %p114_p10 = pnand %p112_p9, %p109_p8 }
  0x18   :  { %117 = shalt.err (!%p114_p10)
}
  0x19   :  { %s118_s30 = scalar_lea.vmem %s35_s12, 256  ;;  %p123_p12 = scmp.lt.s32.totalorder %s35_s12, %s35_s12 }
  0x1a   :  { %p119_p11 = scmp.ne.s32.totalorder %s35_s12, %s118_s30  ;;  %p124_p13 = scmp.lt.s32.totalorder %s118_s30, %s118_s30 }
  0x1c   :  { %p125_p0 = por %p124_p13, %p123_p12 }
  0x1e   :  { %p126_p1 = pnand %p125_p0, %p119_p11 }
  0x20   :  { %129 = shalt.err (!%p126_p1)
}
  0x21   :  { %37 = dma.hbm_to_vmem [thread:$0]  %s213_s1, 256, %s35_s12, [#allocation6]  }
  0x22   :  { %152 = dma.done.wait [#allocation3], 256  }
  0x23   :  { %153 = vsyncadd [#allocation3], 4294967040 }
  0x24   :  { %154 = dma.done.wait [#allocation6], 256  }
  0x25   :  { %155 = vsyncadd [#allocation6], 4294967040  ;;  %v52_v0 = vld [vmem:[#allocation2] sm:$0xff]  ;;  %v54_v1 = vld [vmem:[#allocation5] sm:$0xff]  ;;  %s160_s4 = smov [#allocation7]  }
  0x26   :  { %v53_v2 = vld [vmem:[#allocation2 + $0x8] sm:$0xff]  ;;  %v56_v3 = vsub.f32 %v52_v0, %v54_v1  ;;  %v55_v4 = vld [vmem:[#allocation5 + $0x8] sm:$0xff]  ;;  %s72_s5 = sshll.u32 %s160_s4, 4  ;;  %s73_s5 = int_to_ptr.vmem [resolvable:$true] %s72_s5 }
  0x27   :  { %v57_v5 = vsub.f32 %v53_v2, %v55_v4  ;;  %s130_s6 = scalar_lea.vmem %s73_s5, 256  ;;  %p135_p3 = scmp.lt.s32.totalorder %s73_s5, %s73_s5 }
  0x28   :  { %v58_v6 = vmul.f32 %v56_v3, %v56_v3  ;;  %p131_p2 = scmp.ne.s32.totalorder %s73_s5, %s130_s6  ;;  %p136_p4 = scmp.lt.s32.totalorder %s130_s6, %s130_s6 }
  0x29   :  { %v59_v7 = vmul.f32 %v57_v5, %v57_v5 }
  0x2a   :  { %64 = vst [vmem:[#allocation7] sm:$0xff] %v58_v6  ;;  %p137_p5 = por %p136_p4, %p135_p3 }
  0x2b   :  { %65 = vst [vmem:[#allocation7 + $0x8] sm:$0xff] %v59_v7 }
  0x2c   :  { %p138_p6 = pnand %p137_p5, %p131_p2 }
  0x2e   :  { %141 = shalt.err (!%p138_p6)
}
  0x2f   :  { %s142_s8 = scalar_lea.hbm %s214_s2, 256 }
  0x30   :  { %p143_p7 = scmp.ne.s32.totalorder %s214_s2, %s142_s8  ;;  %p146_p8 = scmp.lt.u32.totalorder %s142_s8, %s214_s2 }
  0x32   :  { %p148_p9 = pnand %p146_p8, %p143_p7 }
  0x34   :  { %151 = shalt.err (!%p148_p9)
}
  0x35   :  { %75 = dma.vmem_to_hbm [thread:$0]  %s73_s5, 256, %s214_s2, [#allocation4]  }
  0x36   :  { %156 = dma.done.wait [#allocation4], 256  }
  0x37   :  { %157 = vsyncadd [#allocation4], 4294967040 }
  0x38   :  { %79 = vsyncpa [#allocation3], 1 }
  0x39   :  { %80 = vsyncpa [#allocation6], 1 }
  0x3a   :  { %81 = vsyncpa [#allocation4], 1 }

</bundles_post_ra>
